<compile_context>
chip_gen: v5e
topology: v5e:2x2
jax: 0.10.0
libtpu: 0.0.40
codegen_flags: <defaults>
</compile_context>

<pallas_src>
import math

import jax
import jax.numpy as jnp
from jax.experimental import pallas as pl
from jax.experimental.pallas import tpu as pltpu

BN_EPS = 1e-5
LANE = 128


def _round_up(x, m):
    return ((x + m - 1) // m) * m


def _pick_row_tile(m, cap=512):
    """Largest row tile <= cap that divides m (multiple of 8), else the full m."""
    if m <= cap:
        return m
    for t in range(cap, 7, -8):
        if m % t == 0:
            return t
    return m


# ----------------------------------------------------------------------------
# Kernel 1: fused 1x1-conv GEMM (bf16 -> f32 acc) + per-channel sum / sum-sq
# ----------------------------------------------------------------------------
def _matmul_stats_kernel(x_ref, w_ref, y_ref, sum_ref, sq_ref):
    # x_ref: (TM, K) bf16   w_ref: (K, N) bf16
    # y_ref: (TM, N) f32    sum_ref/sq_ref: (1, N) f32 accumulators (resident)
    @pl.when(pl.program_id(0) == 0)
    def _():
        sum_ref[...] = jnp.zeros_like(sum_ref)
        sq_ref[...] = jnp.zeros_like(sq_ref)

    y = jnp.dot(x_ref[...], w_ref[...], preferred_element_type=jnp.float32)
    y_ref[...] = y
    # Channels are lane-dense (N multiple of 128); reduce over the sublane axis.
    # Stats stay in f32 (square after the f32 accumulate) to avoid variance
    # underflow with bf16 inputs.
    sum_ref[...] += jnp.sum(y, axis=0, keepdims=True)
    sq_ref[...] += jnp.sum(y * y, axis=0, keepdims=True)


# ----------------------------------------------------------------------------
# Kernel 2: folded BatchNorm affine + ReLU (lane-dense output)
# ----------------------------------------------------------------------------
def _affine_relu_kernel(y_ref, scale_ref, shift_ref, o_ref):
    o_ref[...] = jnp.maximum(y_ref[...] * scale_ref[...] + shift_ref[...], 0.0)


# ----------------------------------------------------------------------------
# Forward wrapper (matches PyTorch Reshape.forward)
# ----------------------------------------------------------------------------
def reshape_forward(hidden_states, w, gamma, beta):
    # hidden_states: (B, n_patch, hidden) f32
    # w: (out_ch, hidden) 1x1-conv weight (no bias); gamma/beta: (out_ch,)
    B, n_patch, hidden = hidden_states.shape
    h = int(math.isqrt(n_patch))
    assert h * h == n_patch, "n_patch must be a perfect square"
    c_out = w.shape[0]

    M, K = B * n_patch, hidden
    N = _round_up(c_out, LANE)          # lane-dense output channels
    TM = _pick_row_tile(M)
    grid_m = M // TM

    # 1x1 conv == GEMM on the token-major layout; skip the NCHW permute/view.
    x2d = hidden_states.reshape(M, K).astype(jnp.bfloat16)
    w_pad = jnp.zeros((K, N), jnp.bfloat16).at[:, :c_out].set(
        jnp.transpose(w).astype(jnp.bfloat16))

    y2d, s, sq = pl.pallas_call(
        _matmul_stats_kernel,
        out_shape=(jax.ShapeDtypeStruct((M, N), jnp.float32),
                   jax.ShapeDtypeStruct((1, N), jnp.float32),
                   jax.ShapeDtypeStruct((1, N), jnp.float32)),
        grid_spec=pltpu.PrefetchScalarGridSpec(
            num_scalar_prefetch=0,
            grid=(grid_m,),
            in_specs=[pl.BlockSpec((TM, K), lambda i: (i, 0)),
                      pl.BlockSpec((K, N), lambda i: (0, 0))],
            out_specs=(pl.BlockSpec((TM, N), lambda i: (i, 0)),
                       pl.BlockSpec((1, N), lambda i: (0, 0)),
                       pl.BlockSpec((1, N), lambda i: (0, 0)))),
        # Stats accumulate across the row-tile axis -> must be "arbitrary".
        # TODO(synk): for v7x dual-TC, split into per-core partial sums + a
        # tiny combine so this axis can be marked parallel.
        compiler_params=pltpu.CompilerParams(
            dimension_semantics=("arbitrary",)),
    )(x2d, w_pad)

    # Fold BN (training-mode batch statistics, biased variance) into an affine.
    cnt = jnp.float32(M)
    mean = s[0] / cnt
    var = jnp.maximum(sq[0] / cnt - mean * mean, 0.0)
    gamma_pad = jnp.zeros((N,), jnp.float32).at[:c_out].set(gamma)
    beta_pad = jnp.zeros((N,), jnp.float32).at[:c_out].set(beta)
    scale = gamma_pad / jnp.sqrt(var + BN_EPS)
    shift = beta_pad - mean * scale

    out2d = pl.pallas_call(
        _affine_relu_kernel,
        out_shape=jax.ShapeDtypeStruct((M, N), jnp.float32),
        grid_spec=pltpu.PrefetchScalarGridSpec(
            num_scalar_prefetch=0,
            grid=(grid_m,),
            in_specs=[pl.BlockSpec((TM, N), lambda i: (i, 0)),
                      pl.BlockSpec((1, N), lambda i: (0, 0)),
                      pl.BlockSpec((1, N), lambda i: (0, 0))],
            out_specs=pl.BlockSpec((TM, N), lambda i: (i, 0))),
        compiler_params=pltpu.CompilerParams(
            dimension_semantics=("parallel",)),
    )(y2d, scale.reshape(1, N), shift.reshape(1, N))

    # Final NCHW layout to match PyTorch output (layout-only, done in XLA).
    out = out2d[:, :c_out].reshape(B, h, h, c_out)
    return jnp.transpose(out, (0, 3, 1, 2))


# ----------------------------------------------------------------------------
# Pure-JAX reference (PyTorch semantics) for a sanity check
# ----------------------------------------------------------------------------
def reshape_forward_ref(hidden_states, w, gamma, beta):
    B, n_patch, hidden = hidden_states.shape
    h = int(math.isqrt(n_patch))
    x = jnp.transpose(hidden_states, (0, 2, 1)).reshape(B, hidden, h, h)
    y = jnp.einsum("oc,bchw->bohw", w, x)
    mean = jnp.mean(y, axis=(0, 2, 3), keepdims=True)
    var = jnp.mean((y - mean) ** 2, axis=(0, 2, 3), keepdims=True)
    yhat = (y - mean) / jnp.sqrt(var + BN_EPS)
    return jnp.maximum(yhat * gamma[None, :, None, None]
                       + beta[None, :, None, None], 0.0)


if __name__ == "__main__":
    B, n_patch, hidden, c_out = 2, 64, 32, 16   # h = w = 8

    key = jax.random.PRNGKey(0)
    kx, kw, kg, kb = jax.random.split(key, 4)
    hidden_states = jax.random.normal(kx, (B, n_patch, hidden), jnp.float32)
    w = 0.1 * jax.random.normal(kw, (c_out, hidden), jnp.float32)
    gamma = 1.0 + 0.1 * jax.random.normal(kg, (c_out,), jnp.float32)
    beta = 0.1 * jax.random.normal(kb, (c_out,), jnp.float32)

    out = jax.block_until_ready(reshape_forward(hidden_states, w, gamma, beta))
    ref = jax.block_until_ready(reshape_forward_ref(hidden_states, w, gamma, beta))

    h = int(math.isqrt(n_patch))
    assert out.shape == (B, c_out, h, h), out.shape
    assert bool(jnp.all(jnp.isfinite(out)))
    assert jnp.allclose(out, ref, atol=2e-2, rtol=2e-2), float(
        jnp.max(jnp.abs(out - ref)))

    print("KERNEL_OK")
</pallas_src>

<mosaic_0001>
module attributes {stable_mosaic.version = 11 : i64} {
  func.func @_matmul_stats_kernel(%arg0: i32, %arg1: memref<128x32xbf16, #tpu.memory_space<vmem>>, %arg2: memref<32x128xbf16, #tpu.memory_space<vmem>>, %arg3: memref<128x128xf32, #tpu.memory_space<vmem>>, %arg4: memref<1x128xf32, #tpu.memory_space<vmem>>, %arg5: memref<1x128xf32, #tpu.memory_space<vmem>>) attributes {dimension_semantics = [#tpu.dimension_semantics<arbitrary>], iteration_bounds = array<i64: 1>, scalar_prefetch = 0 : i64, scratch_operands = 0 : i64, tpu.core_type = #tpu.core_type<tc>, window_params = [{transform_indices = @transform_0, window_bounds = array<i64: 128, 32>}, {pipeline_mode = #tpu.pipeline_mode<synchronous>, transform_indices = @transform_1, window_bounds = array<i64: 32, 128>}, {transform_indices = @transform_2, window_bounds = array<i64: 128, 128>}, {pipeline_mode = #tpu.pipeline_mode<synchronous>, transform_indices = @transform_3, window_bounds = array<i64: 1, 128>}, {pipeline_mode = #tpu.pipeline_mode<synchronous>, transform_indices = @transform_4, window_bounds = array<i64: 1, 128>}]} {
    %c0_i32 = arith.constant 0 : i32
    %0 = arith.cmpi eq, %arg0, %c0_i32 : i32
    %1 = arith.extui %0 : i1 to i32
    %c0_i32_0 = arith.constant 0 : i32
    %2 = arith.cmpi ne, %1, %c0_i32_0 : i32
    scf.if %2 {
      %cst_16 = arith.constant 0.000000e+00 : f32
      %18 = vector.broadcast %cst_16 : f32 to vector<1x128xf32>
      %c0_17 = arith.constant 0 : index
      %c0_18 = arith.constant 0 : index
      %19 = vector.load %arg4[%c0_17, %c0_18] : memref<1x128xf32, #tpu.memory_space<vmem>>, vector<1x128xf32>
      tpu.vector_store %arg4[%c0_17, %c0_18], %18 {strides = array<i32>} : memref<1x128xf32, #tpu.memory_space<vmem>>, vector<1x128xf32>,
      %cst_19 = arith.constant 0.000000e+00 : f32
      %20 = vector.broadcast %cst_19 : f32 to vector<1x128xf32>
      %c0_20 = arith.constant 0 : index
      %c0_21 = arith.constant 0 : index
      %21 = vector.load %arg5[%c0_20, %c0_21] : memref<1x128xf32, #tpu.memory_space<vmem>>, vector<1x128xf32>
      tpu.vector_store %arg5[%c0_20, %c0_21], %20 {strides = array<i32>} : memref<1x128xf32, #tpu.memory_space<vmem>>, vector<1x128xf32>,
    } else {
    }
    %c0 = arith.constant 0 : index
    %c0_1 = arith.constant 0 : index
    %3 = vector.load %arg1[%c0, %c0_1] : memref<128x32xbf16, #tpu.memory_space<vmem>>, vector<128x32xbf16>
    %c0_2 = arith.constant 0 : index
    %c0_3 = arith.constant 0 : index
    %4 = vector.load %arg2[%c0_2, %c0_3] : memref<32x128xbf16, #tpu.memory_space<vmem>>, vector<32x128xbf16>
    %cst = arith.constant dense<0.000000e+00> : vector<128x128xf32>
    %5 = tpu.matmul %3, %4, %cst {dimension_numbers = #tpu.dot_dimension_numbers<[1], [0], [0], [1], [0, 0, 1, 1], [], []>} : vector<128x32xbf16>, vector<32x128xbf16>, vector<128x128xf32> -> vector<128x128xf32>
    %c0_4 = arith.constant 0 : index
    %c0_5 = arith.constant 0 : index
    %6 = vector.load %arg3[%c0_4, %c0_5] : memref<128x128xf32, #tpu.memory_space<vmem>>, vector<128x128xf32>
    tpu.vector_store %arg3[%c0_4, %c0_5], %5 {strides = array<i32>} : memref<128x128xf32, #tpu.memory_space<vmem>>, vector<128x128xf32>,
    %c0_6 = arith.constant 0 : index
    %c0_7 = arith.constant 0 : index
    %7 = vector.load %arg4[%c0_6, %c0_7] : memref<1x128xf32, #tpu.memory_space<vmem>>, vector<1x128xf32>
    %cst_8 = arith.constant dense<0.000000e+00> : vector<128xf32>
    %8 = vector.multi_reduction <add>, %5, %cst_8 [0] : vector<128x128xf32> to vector<128xf32>
    %9 = vector.shape_cast %8 : vector<128xf32> to vector<1x128xf32>
    %10 = arith.addf %7, %9 : vector<1x128xf32>
    %c0_9 = arith.constant 0 : index
    %c0_10 = arith.constant 0 : index
    %11 = vector.load %arg4[%c0_9, %c0_10] : memref<1x128xf32, #tpu.memory_space<vmem>>, vector<1x128xf32>
    tpu.vector_store %arg4[%c0_9, %c0_10], %10 {strides = array<i32>} : memref<1x128xf32, #tpu.memory_space<vmem>>, vector<1x128xf32>,
    %c0_11 = arith.constant 0 : index
    %c0_12 = arith.constant 0 : index
    %12 = vector.load %arg5[%c0_11, %c0_12] : memref<1x128xf32, #tpu.memory_space<vmem>>, vector<1x128xf32>
    %13 = arith.mulf %5, %5 : vector<128x128xf32>
    %cst_13 = arith.constant dense<0.000000e+00> : vector<128xf32>
    %14 = vector.multi_reduction <add>, %13, %cst_13 [0] : vector<128x128xf32> to vector<128xf32>
    %15 = vector.shape_cast %14 : vector<128xf32> to vector<1x128xf32>
    %16 = arith.addf %12, %15 : vector<1x128xf32>
    %c0_14 = arith.constant 0 : index
    %c0_15 = arith.constant 0 : index
    %17 = vector.load %arg5[%c0_14, %c0_15] : memref<1x128xf32, #tpu.memory_space<vmem>>, vector<1x128xf32>
    tpu.vector_store %arg5[%c0_14, %c0_15], %16 {strides = array<i32>} : memref<1x128xf32, #tpu.memory_space<vmem>>, vector<1x128xf32>,
    return
  }
  func.func @transform_0(%arg0: i32) -> (i32, i32) {
    %c0_i32 = arith.constant 0 : i32
    %c0_i32_0 = arith.constant 0 : i32
    return %arg0, %c0_i32 : i32, i32
  }
  func.func @transform_1(%arg0: i32) -> (i32, i32) {
    %c0_i32 = arith.constant 0 : i32
    %c0_i32_0 = arith.constant 0 : i32
    %c0_i32_1 = arith.constant 0 : i32
    return %c0_i32, %c0_i32_0 : i32, i32
  }
  func.func @transform_2(%arg0: i32) -> (i32, i32) {
    %c0_i32 = arith.constant 0 : i32
    %c0_i32_0 = arith.constant 0 : i32
    return %arg0, %c0_i32 : i32, i32
  }
  func.func @transform_3(%arg0: i32) -> (i32, i32) {
    %c0_i32 = arith.constant 0 : i32
    %c0_i32_0 = arith.constant 0 : i32
    %c0_i32_1 = arith.constant 0 : i32
    return %c0_i32, %c0_i32_0 : i32, i32
  }
  func.func @transform_4(%arg0: i32) -> (i32, i32) {
    %c0_i32 = arith.constant 0 : i32
    %c0_i32_0 = arith.constant 0 : i32
    %c0_i32_1 = arith.constant 0 : i32
    return %c0_i32, %c0_i32_0 : i32, i32
  }
}

</mosaic_0001>

<bundles_post_ra>
// kernel: tpu_custom_call.1
= control target key start
LH: loop header
LB: loop body
LE: loop exit
PB: predicated region body
PF: predicated region fallthrough
CT: control target
= control target key end

     0   :  { %10 = vsyncpa [#allocation3], 0  ;;  %s534_s0 = inlined_call_operand.vmem [shape: bf16[128,32], index: 0, kind: input, shape index: {}]   ;;  %s535_s1 = inlined_call_operand.vmem [shape: bf16[32,128], index: 1, kind: input, shape index: {}]   ;;  %s536_s2 = inlined_call_operand.hbm [shape: f32[128,128], index: 2, kind: output, shape index: {0}]   ;;  %s537_s3 = inlined_call_operand.hbm [shape: f32[1,128], index: 3, kind: output, shape index: {1}]   ;;  %s538_s4 = inlined_call_operand.hbm [shape: f32[1,128], index: 4, kind: output, shape index: {2}]  }
   0x1   :  { %v355_v0 = vld [vmem:[%s535_s1 + $0x8] sm:$0xff]  ;;  %v354_v1 = vld [vmem:[%s535_s1] sm:$0xff] }
   0x2   :  { %126 = vmatpush.bf16.msra.mxu0 %v355_v0  ;;  %356 = vmatpush.bf16.msra.mxu1 %v355_v0 }
   0x3   :  { %357 = vmatpush.bf16.msra.mxu2 %v355_v0  ;;  %358 = vmatpush.bf16.msra.mxu3 %v355_v0 }
   0x4   :  { %11 = vsyncpa [#allocation5], 0  ;;  %v346_v2 = vld [vmem:[%s534_s0] sm:$0xff]  ;;  %v348_v3 = vld [vmem:[%s534_s0 + $0x10] sm:$0xff]  ;;  %vm95_vm0 = vcmask 261120   ;;  %s255_s11 = sshll.u32 %s536_s2, 4  ;;  %s256_s11 = int_to_ptr.hbm [resolvable:$true] %s255_s11 }
   0x5   :  { %v350_v4 = vld [vmem:[%s534_s0 + $0x20] sm:$0xff]  ;;  %v352_v5 = vld [vmem:[%s534_s0 + $0x30] sm:$0xff]  ;;  %v347_v6 = vld [vmem:[%s534_s0 + $0x8] sm:$0xff]  ;;  %v445_v36 = vmov 0.0   ;;  %s446_s12 = smov 128   ;;  %s447_s2 = smov 8  }
   0x6   :  { %127 = vmatpush.bf16.msra.mxu0 %v354_v1  ;;  %359 = vmatpush.bf16.msra.mxu1 %v354_v1  ;;  %v349_v7 = vld [vmem:[%s534_s0 + $0x18] sm:$0xff]  ;;  %v351_v8 = vld [vmem:[%s534_s0 + $0x28] sm:$0xff]  ;;  %21 = vst [vmem:[#allocation4] sm:$0x1] %v445_v36  ;;  %s448_s13 = smov [#allocation4]   ;;  %s269_s17 = sshll.u32 %s537_s3, 4  ;;  %s270_s17 = int_to_ptr.hbm [resolvable:$true] %s269_s17 }
   0x7   :  { %360 = vmatpush.bf16.msra.mxu2 %v354_v1  ;;  %361 = vmatpush.bf16.msra.mxu3 %v354_v1  ;;  %v353_v9 = vld [vmem:[%s534_s0 + $0x38] sm:$0xff]  ;;  %s444_s0 = smov [#allocation2]   ;;  %22 = vst [vmem:[#allocation6] sm:$0x1] %v445_v36  ;;  %s267_s14 = sshll.u32 %s448_s13, 4  ;;  %s268_s14 = int_to_ptr.vmem [resolvable:$true] %s267_s14 }
   0x8   :  { %s253_s8 = sshll.u32 %s444_s0, 4  ;;  %s449_s18 = smov [#allocation6]   ;;  %s254_s8 = int_to_ptr.vmem [resolvable:$true] %s253_s8 }
   0x9   :  { %338 = vmatmul.msk.bf16.vlgmr.msra.gmra.mxu0 %vm95_vm0, %v346_v2  ;;  %340 = vmatmul.msk.bf16.vlgmr.msra.gmra.mxu1 %vm95_vm0, %v348_v3  ;;  %s278_s19 = sshll.u32 %s449_s18, 4  ;;  %s280_s22 = sshll.u32 %s538_s4, 4  ;;  %s279_s19 = int_to_ptr.vmem [resolvable:$true] %s278_s19  ;;  %s281_s22 = int_to_ptr.hbm [resolvable:$true] %s280_s22 }
   0xa   :  { %342 = vmatmul.msk.bf16.vlgmr.msra.gmra.mxu2 %vm95_vm0, %v350_v4  ;;  %344 = vmatmul.msk.bf16.vlgmr.msra.gmra.mxu3 %vm95_vm0, %v352_v5 }
  0x19   :  { %339 = vmatmul.msk.bf16.gmra.mxu0 %vm95_vm0, %v347_v6  ;;  %341 = vmatmul.msk.bf16.gmra.mxu1 %vm95_vm0, %v349_v7 }
  0x1a   :  { %343 = vmatmul.msk.bf16.gmra.mxu2 %vm95_vm0, %v351_v8  ;;  %345 = vmatmul.msk.bf16.gmra.mxu3 %vm95_vm0, %v353_v9 }
  0x86   :  { %v129_v10 = vpop.f32.mrf.mxu0  ;;  %v139_v11 = vpop.f32.mrf.mxu1 }
  0x87   :  { %169 = vst [vmem:[#allocation2] sm:$0xff] %v129_v10  ;;  %v210_v21 = vmul.f32 %v129_v10, %v129_v10  ;;  %v214_v33 = vmul.f32 %v139_v11, %v139_v11 }
  0x88   :  { %173 = vst [vmem:[#allocation2 + $0x20] sm:$0xff] %v139_v11 }
  0x8d   :  { %v149_v12 = vpop.f32.mrf.mxu2  ;;  %v513_v13 = vpop.f32.mrf.mxu3 }
  0x8e   :  { %v131_v14 = vpop.f32.mrf.mxu0  ;;  %v141_v15 = vpop.f32.mrf.mxu1  ;;  %177 = vst [vmem:[#allocation2 + $0x40] sm:$0xff] %v149_v12  ;;  %v218_v48 = vmul.f32 %v149_v12, %v149_v12  ;;  %v222_v60 = vmul.f32 %v513_v13, %v513_v13 }
  0x8f   :  { %170 = vst [vmem:[#allocation2 + $0x8] sm:$0xff] %v131_v14  ;;  %v211_v20 = vmul.f32 %v131_v14, %v131_v14  ;;  %v186_v22 = vadd.f32 %v131_v14, %v129_v10  ;;  %v215_v37 = vmul.f32 %v141_v15, %v141_v15 }
  0x90   :  { %174 = vst [vmem:[#allocation2 + $0x28] sm:$0xff] %v141_v15 }
  0x91   :  { %181 = vst [vmem:[#allocation2 + $0x60] sm:$0xff] %v513_v13  ;;  %v226_v24 = vadd.f32 %v211_v20, %v210_v21  ;;  %v209_v21 = vld [vmem:[#allocation6] sm:$0x1] }
  0x95   :  { %v151_v16 = vpop.f32.mrf.mxu2  ;;  %v516_v17 = vpop.f32.mrf.mxu3 }
  0x96   :  { %v134_v18 = vpop.f32.mrf.mxu0  ;;  %v144_v19 = vpop.f32.mrf.mxu1  ;;  %178 = vst [vmem:[#allocation2 + $0x48] sm:$0xff] %v151_v16  ;;  %v219_v51 = vmul.f32 %v151_v16, %v151_v16  ;;  %v223_v63 = vmul.f32 %v516_v17, %v516_v17 }
  0x97   :  { %171 = vst [vmem:[#allocation2 + $0x10] sm:$0xff] %v134_v18  ;;  %v212_v23 = vmul.f32 %v134_v18, %v134_v18  ;;  %v187_v25 = vadd.f32 %v186_v22, %v134_v18  ;;  %v216_v40 = vmul.f32 %v144_v19, %v144_v19 }
  0x98   :  { %175 = vst [vmem:[#allocation2 + $0x30] sm:$0xff] %v144_v19 }
  0x99   :  { %182 = vst [vmem:[#allocation2 + $0x68] sm:$0xff] %v516_v17  ;;  %v227_v30 = vadd.f32 %v226_v24, %v212_v23 }
  0x9d   :  { %v154_v26 = vpop.f32.mrf.mxu2  ;;  %v164_v27 = vpop.f32.mrf.mxu3 }
  0x9e   :  { %v136_v28 = vpop.f32.mrf.mxu0  ;;  %v146_v29 = vpop.f32.mrf.mxu1  ;;  %179 = vst [vmem:[#allocation2 + $0x50] sm:$0xff] %v154_v26  ;;  %v220_v55 = vmul.f32 %v154_v26, %v154_v26  ;;  %v224_v3 = vmul.f32 %v164_v27, %v164_v27 }
  0x9f   :  { %172 = vst [vmem:[#allocation2 + $0x18] sm:$0xff] %v136_v28  ;;  %v188_v31 = vadd.f32 %v187_v25, %v136_v28  ;;  %v213_v32 = vmul.f32 %v136_v28, %v136_v28  ;;  %v217_v46 = vmul.f32 %v146_v29, %v146_v29 }
  0xa0   :  { %176 = vst [vmem:[#allocation2 + $0x38] sm:$0xff] %v146_v29 }
  0xa1   :  { %v189_v34 = vadd.f32 %v188_v31, %v139_v11  ;;  %v228_v35 = vadd.f32 %v227_v30, %v213_v32  ;;  %183 = vst [vmem:[#allocation2 + $0x70] sm:$0xff] %v164_v27 }
  0xa3   :  { %v229_v38 = vadd.f32 %v228_v35, %v214_v33  ;;  %v190_v39 = vadd.f32 %v189_v34, %v141_v15 }
  0xa5   :  { %v191_v41 = vadd.f32 %v190_v39, %v144_v19  ;;  %v230_v42 = vadd.f32 %v229_v38, %v215_v37  ;;  %v156_v43 = vpop.f32.mrf.mxu2  ;;  %v166_v44 = vpop.f32.mrf.mxu3  ;;  %v185_v19 = vld [vmem:[#allocation4] sm:$0x1] }
  0xa6   :  { %180 = vst [vmem:[#allocation2 + $0x58] sm:$0xff] %v156_v43  ;;  %v221_v59 = vmul.f32 %v156_v43, %v156_v43  ;;  %v225_v7 = vmul.f32 %v166_v44, %v166_v44 }
  0xa7   :  { %v192_v45 = vadd.f32 %v191_v41, %v146_v29  ;;  %v231_v47 = vadd.f32 %v230_v42, %v216_v40  ;;  %184 = vst [vmem:[#allocation2 + $0x78] sm:$0xff] %v166_v44 }
  0xa8   :  { %261 = dma.vmem_to_hbm [thread:$0]  %s254_s8, 2048, %s256_s11, [#allocation3], %s446_s12, %s446_s12, %s447_s2  }
  0xa9   :  { %v193_v49 = vadd.f32 %v192_v45, %v149_v12  ;;  %v232_v50 = vadd.f32 %v231_v47, %v217_v46 }
  0xab   :  { %v233_v52 = vadd.f32 %v232_v50, %v218_v48  ;;  %v194_v53 = vadd.f32 %v193_v49, %v151_v16 }
  0xad   :  { %v195_v54 = vadd.f32 %v194_v53, %v154_v26  ;;  %v234_v56 = vadd.f32 %v233_v52, %v219_v51 }
  0xaf   :  { %v235_v57 = vadd.f32 %v234_v56, %v220_v55  ;;  %v196_v58 = vadd.f32 %v195_v54, %v156_v43 }
  0xb1   :  { %v197_v61 = vadd.f32 %v196_v58, %v513_v13  ;;  %v236_v62 = vadd.f32 %v235_v57, %v221_v59 }
  0xb3   :  { %v237_v0 = vadd.f32 %v236_v62, %v222_v60  ;;  %v198_v1 = vadd.f32 %v197_v61, %v516_v17 }
  0xb5   :  { %v199_v2 = vadd.f32 %v198_v1, %v164_v27  ;;  %v238_v4 = vadd.f32 %v237_v0, %v223_v63 }
  0xb7   :  { %v239_v5 = vadd.f32 %v238_v4, %v224_v3  ;;  %v200_v6 = vadd.f32 %v199_v2, %v166_v44 }
  0xb9   :  { %v201_v8 = vrot.slane %v200_v6, 4  ;;  %v240_v9 = vadd.f32 %v239_v5, %v225_v7 }
  0xbb   :  { %v202_v10 = vadd.f32 %v201_v8, %v200_v6  ;;  %v241_v11 = vrot.slane %v240_v9, 4 }
  0xbd   :  { %v203_v12 = vrot.slane %v202_v10, 2  ;;  %v242_v14 = vadd.f32 %v241_v11, %v240_v9 }
  0xbf   :  { %v204_v13 = vadd.f32 %v203_v12, %v202_v10  ;;  %v243_v15 = vrot.slane %v242_v14, 2 }
  0xc1   :  { %v205_v16 = vrot.slane %v204_v13, 1  ;;  %v244_v18 = vadd.f32 %v243_v15, %v242_v14 }
  0xc3   :  { %v206_v17 = vadd.f32 %v205_v16, %v204_v13  ;;  %v245_v20 = vrot.slane %v244_v18, 1 }
  0xc5   :  { %v207_v22 = vadd.f32 %v206_v17, %v185_v19  ;;  %v246_v23 = vadd.f32 %v245_v20, %v244_v18 }
  0xc7   :  { %208 = vst [vmem:[#allocation4] sm:$0x1] %v207_v22  ;;  %v247_v24 = vadd.f32 %v246_v23, %v209_v21 }
  0xc8   :  { %272 = dma.vmem_to_hbm [thread:$0]  %s268_s14, 16, %s270_s17, [#allocation5]  }
  0xc9   :  { %248 = vst [vmem:[#allocation6] sm:$0x1] %v247_v24 }
  0xca   :  { %283 = dma.vmem_to_hbm [thread:$0]  %s279_s19, 16, %s281_s22, [#allocation5]  }
  0xcb   :  { %440 = dma.done.wait [#allocation3], 2048  }
  0xcc   :  { %441 = vsyncadd [#allocation3], 4294965248 }
  0xcd   :  { %442 = dma.done.wait [#allocation5], 32  }
  0xce   :  { %443 = vsyncadd [#allocation5], 4294967264 }
  0xcf   :  { %296 = vsyncpa [#allocation3], 1 }
  0xd0   :  { %297 = vsyncpa [#allocation5], 1 }

</bundles_post_ra>
